<compile_context>
chip_gen: v5e
topology: v5e:2x2
jax: 0.10.0
libtpu: 0.0.40
codegen_flags: <defaults>
</compile_context>

<pallas_src>
import jax
import jax.numpy as jnp
from jax.experimental import pallas as pl
from jax.experimental.pallas import tpu as pltpu


def _mlp_kernel(x_ref, wg_ref, wu_ref, wd_ref, o_ref, acc_ref):
    """One (token-tile i, intermediate-tile j) grid step.

    x_ref   : (tm, hidden)        token activations (resident across j)
    wg_ref  : (hidden, tn)        gate weight slab (streamed)
    wu_ref  : (hidden, tn)        up weight slab   (streamed)
    wd_ref  : (tn, hidden)        down weight slab (streamed)
    o_ref   : (tm, hidden)        output (resident across j)
    acc_ref : (tm, hidden) f32    partial down-projection accumulator
    """
    j = pl.program_id(1)

    @pl.when(j == 0)
    def _():
        acc_ref[...] = jnp.zeros_like(acc_ref)

    x = x_ref[...]
    # Two lane-aligned MXU dots; f32 accumulation via preferred_element_type.
    gate = jnp.dot(x, wg_ref[...], preferred_element_type=jnp.float32)
    up = jnp.dot(x, wu_ref[...], preferred_element_type=jnp.float32)

    # SiLU(gate) * up in f32 on VPU/EUP.
    h = (gate * jax.nn.sigmoid(gate)) * up

    # Partial down projection for this intermediate slab, accumulated in f32.
    acc_ref[...] += jnp.dot(h.astype(wd_ref.dtype), wd_ref[...],
                            preferred_element_type=jnp.float32)

    @pl.when(j == pl.num_programs(1) - 1)
    def _():
        o_ref[...] = acc_ref[...].astype(o_ref.dtype)


def llama_compressed_mlp(x, w_gate_up, w_down, *,
                         token_tile=512, inter_tile=512,
                         compute_dtype=jnp.bfloat16, vmem_limit_bytes=None):
    """Fused Llama MLP forward.

    x:         (..., hidden)
    w_gate_up: (hidden, 2*intermediate)   columns = [gate | up]
    w_down:    (intermediate, hidden)
    compute_dtype: MXU input dtype (default bf16). SiLU and the down-projection
                   accumulation are always f32. Pass jnp.float32 (or None to
                   keep x.dtype) for a full-precision path.
    """
    hidden = x.shape[-1]
    intermediate = w_down.shape[0]
    assert w_gate_up.shape == (hidden, 2 * intermediate)
    assert w_down.shape == (intermediate, hidden)

    out_dtype = x.dtype
    if compute_dtype is None:
        compute_dtype = x.dtype
    x = x.astype(compute_dtype)
    w_gate_up = w_gate_up.astype(compute_dtype)
    w_down = w_down.astype(compute_dtype)

    orig_shape = x.shape
    x2d = x.reshape(-1, hidden)
    n_tokens = x2d.shape[0]

    cbytes = jnp.dtype(compute_dtype).itemsize
    obytes = jnp.dtype(out_dtype).itemsize

    # --- generation-aware VMEM budget (v7x: 64 MiB/TC, v5e/v6e: 128 MiB). ---
    try:
        vmem_cap = int(getattr(pltpu.get_tpu_info(), "vmem_capacity_bytes",
                               64 << 20))
    except Exception:  # conservative fallback
        vmem_cap = 64 << 20
    vmem_budget = max(32 << 20, int(vmem_cap * 0.85))
    if vmem_limit_bytes is not None:
        vmem_budget = min(vmem_budget, int(vmem_limit_bytes))

    # --- initial tile choice -------------------------------------------------
    tm = n_tokens if n_tokens <= token_tile else token_tile
    if intermediate <= 128:
        tn = intermediate
    else:
        tn = min(inter_tile, intermediate)
        tn = max(128, (tn // 128) * 128)

    def _footprint(tm_, tn_):
        return (2 * tm_ * hidden * cbytes                 # x (double-buffered)
                + 2 * (2 * hidden * tn_) * cbytes         # gate+up slabs (x2 buf)
                + 2 * tn_ * hidden * cbytes               # down slab (x2 buf)
                + 2 * tm_ * hidden * obytes               # output (x2 buf)
                + tm_ * hidden * 4                        # f32 accumulator
                + 3 * tm_ * tn_ * 4)                      # gate/up/h f32 temps

    # Shrink tiles until the pipelined working set fits the VMEM budget.
    for _ in range(32):
        if _footprint(tm, tn) <= vmem_budget:
            break
        if tn > 128 and tn % 128 == 0:
            tn = max(128, ((tn // 2) // 128) * 128)
        elif tm > 8:
            tm = max(8, ((tm // 2) // 8) * 8)
        else:
            break

    # --- token padding -------------------------------------------------------
    n_tok_tiles = int(pl.cdiv(n_tokens, tm))
    padded_tokens = n_tok_tiles * tm
    if padded_tokens != n_tokens:
        x2d = jnp.pad(x2d, ((0, padded_tokens - n_tokens), (0, 0)))

    # --- intermediate tiling / weight plumbing -------------------------------
    n_int_tiles = int(pl.cdiv(intermediate, tn))
    padded_inter = n_int_tiles * tn

    if padded_inter == intermediate and tn % 128 == 0:
        # Zero-copy path: both gate and up BlockSpecs index straight into the
        # fused gate_up weight (gate block j, up block j + n_int_tiles).
        wg_arr = w_gate_up
        wu_arr = w_gate_up
        wd_arr = w_down
        up_off = n_int_tiles
    else:
        # Ragged / sub-128 intermediate: split and zero-pad once. Exact:
        # silu(0)*0 = 0 and zero down-rows contribute nothing.
        w_gate = w_gate_up[:, :intermediate]
        w_up = w_gate_up[:, intermediate:]
        pad = padded_inter - intermediate
        if pad:
            w_gate = jnp.pad(w_gate, ((0, 0), (0, pad)))
            w_up = jnp.pad(w_up, ((0, 0), (0, pad)))
            w_down = jnp.pad(w_down, ((0, pad), (0, 0)))
        wg_arr, wu_arr, wd_arr = w_gate, w_up, w_down
        up_off = 0

    def _xo_map(i, j):
        return (i, 0)

    def _wg_map(i, j):
        return (0, j)

    def _wu_map(i, j):
        return (0, j + up_off)

    def _wd_map(i, j):
        return (j, 0)

    weight_bytes = (2 * hidden * padded_inter + padded_inter * hidden) * cbytes
    cost = pl.CostEstimate(
        flops=int(6 * padded_tokens * hidden * padded_inter),
        transcendentals=int(padded_tokens * padded_inter),
        bytes_accessed=int(padded_tokens * hidden * (cbytes + obytes)
                           + n_tok_tiles * weight_bytes),
    )

    out = pl.pallas_call(
        _mlp_kernel,
        out_shape=jax.ShapeDtypeStruct((padded_tokens, hidden), out_dtype),
        grid_spec=pltpu.PrefetchScalarGridSpec(
            num_scalar_prefetch=0,
            grid=(n_tok_tiles, n_int_tiles),          # reduction axis innermost
            in_specs=[
                pl.BlockSpec((tm, hidden), _xo_map),   # x
                pl.BlockSpec((hidden, tn), _wg_map),   # gate weight slab
                pl.BlockSpec((hidden, tn), _wu_map),   # up weight slab
                pl.BlockSpec((tn, hidden), _wd_map),   # down weight slab
            ],
            out_specs=pl.BlockSpec((tm, hidden), _xo_map),
            scratch_shapes=[pltpu.VMEM((tm, hidden), jnp.float32)],
        ),
        compiler_params=pltpu.CompilerParams(
            dimension_semantics=("parallel", "arbitrary"),
            vmem_limit_bytes=int(vmem_budget)),
        cost_estimate=cost,
    )(x2d, wg_arr, wu_arr, wd_arr)

    # TODO(synk): v7x decode (n_tok_tiles == 1): split the reduction axis across
    #             the two TensorCores (CORE_PARALLEL + partial-sum combine) so
    #             both cores' DMA paths stream weights.

    if padded_tokens != n_tokens:
        out = out[:n_tokens]
    return out.reshape(orig_shape)


def _reference(x, w_gate_up, w_down):
    gu = jnp.dot(x, w_gate_up)
    d = gu.shape[-1] // 2
    h = jax.nn.silu(gu[..., :d]) * gu[..., d:]
    return jnp.dot(h, w_down)


if __name__ == "__main__":
    key = jax.random.PRNGKey(0)

    # --- Test 1: small, module-consistent shapes (split sub-128 path). ------
    batch, seq, hidden, intermediate = 2, 8, 32, 64
    kx, kgu, kd, k2 = jax.random.split(key, 4)
    x = jax.random.normal(kx, (batch, seq, hidden), dtype=jnp.float32)
    w_gate_up = jax.random.normal(kgu, (hidden, 2 * intermediate),
                                  dtype=jnp.float32) * 0.05
    w_down = jax.random.normal(kd, (intermediate, hidden),
                               dtype=jnp.float32) * 0.05
    ref = _reference(x, w_gate_up, w_down)

    out_bf16 = jax.block_until_ready(
        llama_compressed_mlp(x, w_gate_up, w_down))           # bf16 default
    assert out_bf16.shape == (batch, seq, hidden)
    assert out_bf16.dtype == x.dtype
    assert jnp.allclose(out_bf16, ref, atol=1.5e-2, rtol=1.5e-2)

    out_f32 = jax.block_until_ready(
        llama_compressed_mlp(x, w_gate_up, w_down, compute_dtype=jnp.float32))
    assert jnp.allclose(out_f32, ref, atol=1e-4, rtol=1e-4)

    # --- Test 2: fused zero-copy weight path, multi-tile reduction, ragged
    #     token count (token padding); f32 compute. --------------------------
    hidden2, inter2, tokens2 = 128, 512, 600
    ka, kb, kc = jax.random.split(k2, 3)
    x2 = jax.random.normal(ka, (tokens2, hidden2), dtype=jnp.float32)
    wgu2 = jax.random.normal(kb, (hidden2, 2 * inter2), dtype=jnp.float32) * 0.05
    wd2 = jax.random.normal(kc, (inter2, hidden2), dtype=jnp.float32) * 0.05
    ref2 = _reference(x2, wgu2, wd2)
    out2 = jax.block_until_ready(
        llama_compressed_mlp(x2, wgu2, wd2, token_tile=512, inter_tile=256,
                             compute_dtype=jnp.float32))
    err2 = float(jnp.max(jnp.abs(out2 - ref2)))
    scale2 = float(jnp.max(jnp.abs(ref2))) + 1e-6
    assert err2 <= 0.03 * scale2 + 1e-4, (err2, scale2)

    # --- Test 3: ragged intermediate (zero-padded to tile multiple), bf16. --
    hidden3, inter3, tokens3 = 128, 320, 96
    kd3, ke3, kf3 = jax.random.split(k2, 3)
    x3 = jax.random.normal(kd3, (tokens3, hidden3), dtype=jnp.float32)
    wgu3 = jax.random.normal(ke3, (hidden3, 2 * inter3), dtype=jnp.float32) * 0.05
    wd3 = jax.random.normal(kf3, (inter3, hidden3), dtype=jnp.float32) * 0.05
    ref3 = _reference(x3, wgu3, wd3)
    out3 = jax.block_until_ready(
        llama_compressed_mlp(x3, wgu3, wd3, inter_tile=256))
    err3 = float(jnp.max(jnp.abs(out3 - ref3)))
    scale3 = float(jnp.max(jnp.abs(ref3))) + 1e-6
    assert err3 <= 0.08 * scale3 + 1e-3, (err3, scale3)

    print("KERNEL_OK")
</pallas_src>

<mosaic_0001>
module attributes {stable_mosaic.version = 11 : i64} {
  func.func @_mlp_kernel(%arg0: i32, %arg1: i32, %arg2: memref<16x32xbf16, #tpu.memory_space<vmem>>, %arg3: memref<32x64xbf16, #tpu.memory_space<vmem>>, %arg4: memref<32x64xbf16, #tpu.memory_space<vmem>>, %arg5: memref<64x32xbf16, #tpu.memory_space<vmem>>, %arg6: memref<16x32xf32, #tpu.memory_space<vmem>>, %arg7: memref<16x32xf32, #tpu.memory_space<vmem>>) attributes {dimension_semantics = [#tpu.dimension_semantics<parallel>, #tpu.dimension_semantics<arbitrary>], iteration_bounds = array<i64: 1, 1>, scalar_prefetch = 0 : i64, scratch_operands = 1 : i64, tpu.core_type = #tpu.core_type<tc>, window_params = [{transform_indices = @transform_0, window_bounds = array<i64: 16, 32>}, {transform_indices = @transform_1, window_bounds = array<i64: 32, 64>}, {transform_indices = @transform_2, window_bounds = array<i64: 32, 64>}, {transform_indices = @transform_3, window_bounds = array<i64: 64, 32>}, {transform_indices = @transform_4, window_bounds = array<i64: 16, 32>}]} {
    %c0_i32 = arith.constant 0 : i32
    %0 = arith.cmpi eq, %arg1, %c0_i32 : i32
    %1 = arith.extui %0 : i1 to i32
    %c0_i32_0 = arith.constant 0 : i32
    %2 = arith.cmpi ne, %1, %c0_i32_0 : i32
    scf.if %2 {
      %cst_17 = arith.constant 0.000000e+00 : f32
      %24 = vector.broadcast %cst_17 : f32 to vector<16x32xf32>
      %c0_18 = arith.constant 0 : index
      %c0_19 = arith.constant 0 : index
      %25 = vector.load %arg7[%c0_18, %c0_19] : memref<16x32xf32, #tpu.memory_space<vmem>>, vector<16x32xf32>
      tpu.vector_store %arg7[%c0_18, %c0_19], %24 {strides = array<i32>} : memref<16x32xf32, #tpu.memory_space<vmem>>, vector<16x32xf32>,
    } else {
    }
    %c0 = arith.constant 0 : index
    %c0_1 = arith.constant 0 : index
    %3 = vector.load %arg2[%c0, %c0_1] : memref<16x32xbf16, #tpu.memory_space<vmem>>, vector<16x32xbf16>
    %c0_2 = arith.constant 0 : index
    %c0_3 = arith.constant 0 : index
    %4 = vector.load %arg3[%c0_2, %c0_3] : memref<32x64xbf16, #tpu.memory_space<vmem>>, vector<32x64xbf16>
    %cst = arith.constant dense<0.000000e+00> : vector<16x64xf32>
    %5 = tpu.matmul %3, %4, %cst {dimension_numbers = #tpu.dot_dimension_numbers<[1], [0], [0], [1], [0, 0, 1, 1], [], []>} : vector<16x32xbf16>, vector<32x64xbf16>, vector<16x64xf32> -> vector<16x64xf32>
    %c0_4 = arith.constant 0 : index
    %c0_5 = arith.constant 0 : index
    %6 = vector.load %arg4[%c0_4, %c0_5] : memref<32x64xbf16, #tpu.memory_space<vmem>>, vector<32x64xbf16>
    %cst_6 = arith.constant dense<0.000000e+00> : vector<16x64xf32>
    %7 = tpu.matmul %3, %6, %cst_6 {dimension_numbers = #tpu.dot_dimension_numbers<[1], [0], [0], [1], [0, 0, 1, 1], [], []>} : vector<16x32xbf16>, vector<32x64xbf16>, vector<16x64xf32> -> vector<16x64xf32>
    %8 = arith.negf %5 : vector<16x64xf32>
    %9 = math.exp %8 : vector<16x64xf32>
    %cst_7 = arith.constant 1.000000e+00 : f32
    %10 = vector.broadcast %cst_7 : f32 to vector<16x64xf32>
    %11 = arith.addf %10, %9 : vector<16x64xf32>
    %12 = arith.divf %10, %11 : vector<16x64xf32>
    %13 = arith.mulf %5, %12 : vector<16x64xf32>
    %14 = arith.mulf %13, %7 : vector<16x64xf32>
    %c0_8 = arith.constant 0 : index
    %c0_9 = arith.constant 0 : index
    %15 = vector.load %arg7[%c0_8, %c0_9] : memref<16x32xf32, #tpu.memory_space<vmem>>, vector<16x32xf32>
    %16 = arith.truncf %14 : vector<16x64xf32> to vector<16x64xbf16>
    %c0_10 = arith.constant 0 : index
    %c0_11 = arith.constant 0 : index
    %17 = vector.load %arg5[%c0_10, %c0_11] : memref<64x32xbf16, #tpu.memory_space<vmem>>, vector<64x32xbf16>
    %cst_12 = arith.constant dense<0.000000e+00> : vector<16x32xf32>
    %18 = tpu.matmul %16, %17, %cst_12 {dimension_numbers = #tpu.dot_dimension_numbers<[1], [0], [0], [1], [0, 0, 1, 1], [], []>} : vector<16x64xbf16>, vector<64x32xbf16>, vector<16x32xf32> -> vector<16x32xf32>
    %19 = arith.addf %15, %18 : vector<16x32xf32>
    %c0_13 = arith.constant 0 : index
    %c0_14 = arith.constant 0 : index
    %20 = vector.load %arg7[%c0_13, %c0_14] : memref<16x32xf32, #tpu.memory_space<vmem>>, vector<16x32xf32>
    tpu.vector_store %arg7[%c0_13, %c0_14], %19 {strides = array<i32>} : memref<16x32xf32, #tpu.memory_space<vmem>>, vector<16x32xf32>,
    %c0_i32_15 = arith.constant 0 : i32
    %21 = arith.cmpi eq, %arg1, %c0_i32_15 : i32
    %22 = arith.extui %21 : i1 to i32
    %c0_i32_16 = arith.constant 0 : i32
    %23 = arith.cmpi ne, %22, %c0_i32_16 : i32
    scf.if %23 {
      %c0_17 = arith.constant 0 : index
      %c0_18 = arith.constant 0 : index
      %24 = vector.load %arg7[%c0_17, %c0_18] : memref<16x32xf32, #tpu.memory_space<vmem>>, vector<16x32xf32>
      %c0_19 = arith.constant 0 : index
      %c0_20 = arith.constant 0 : index
      %25 = vector.load %arg6[%c0_19, %c0_20] : memref<16x32xf32, #tpu.memory_space<vmem>>, vector<16x32xf32>
      tpu.vector_store %arg6[%c0_19, %c0_20], %24 {strides = array<i32>} : memref<16x32xf32, #tpu.memory_space<vmem>>, vector<16x32xf32>,
    } else {
    }
    return
  }
  func.func @transform_0(%arg0: i32, %arg1: i32) -> (i32, i32) {
    %c0_i32 = arith.constant 0 : i32
    %c0_i32_0 = arith.constant 0 : i32
    return %arg0, %c0_i32 : i32, i32
  }
  func.func @transform_1(%arg0: i32, %arg1: i32) -> (i32, i32) {
    %c0_i32 = arith.constant 0 : i32
    %c0_i32_0 = arith.constant 0 : i32
    return %c0_i32, %arg1 : i32, i32
  }
  func.func @transform_2(%arg0: i32, %arg1: i32) -> (i32, i32) {
    %c0_i32 = arith.constant 0 : i32
    %0 = arith.addi %arg1, %c0_i32 : i32
    %c0_i32_0 = arith.constant 0 : i32
    %c0_i32_1 = arith.constant 0 : i32
    return %c0_i32_0, %0 : i32, i32
  }
  func.func @transform_3(%arg0: i32, %arg1: i32) -> (i32, i32) {
    %c0_i32 = arith.constant 0 : i32
    %c0_i32_0 = arith.constant 0 : i32
    return %arg1, %c0_i32 : i32, i32
  }
  func.func @transform_4(%arg0: i32, %arg1: i32) -> (i32, i32) {
    %c0_i32 = arith.constant 0 : i32
    %c0_i32_0 = arith.constant 0 : i32
    return %arg0, %c0_i32 : i32, i32
  }
}

</mosaic_0001>

<bundles_post_ra>
// kernel: tpu_custom_call.1
= control target key start
LH: loop header
LB: loop body
LE: loop exit
PB: predicated region body
PF: predicated region fallthrough
CT: control target
= control target key end

     0   :  { %s376_s0 = inlined_call_operand.vmem [shape: bf16[16,32], index: 0, kind: input, shape index: {}]   ;;  %s377_s1 = inlined_call_operand.vmem [shape: bf16[32,64], index: 1, kind: input, shape index: {}]   ;;  %s378_s2 = inlined_call_operand.vmem [shape: bf16[32,64], index: 2, kind: input, shape index: {}]   ;;  %s379_s3 = inlined_call_operand.vmem [shape: bf16[64,32], index: 3, kind: input, shape index: {}]   ;;  %s380_s4 = inlined_call_operand.hbm [shape: f32[16,32], index: 4, kind: output, shape index: {}]  }
   0x1   :  { %v264_v0 = vld [vmem:[%s377_s1 + $0x8] sm:$0xff] }
   0x2   :  { %v266_v1 = vld [vmem:[%s378_s2 + $0x8] sm:$0xff] }
   0x3   :  { %9 = vsyncpa [#allocation4], 0  ;;  %59 = vmatpush.bf16.msra.mxu0 %v264_v0  ;;  %v263_v2 = vld [vmem:[%s377_s1] sm:$0xff]  ;;  %89 = vmatpush.bf16.msra.mxu1 %v266_v1  ;;  %vm23_vm0 = vcmask 261120   ;;  %v270_v5 = vld [vmem:[%s379_s3 + $0x18] sm:$0xff]  ;;  %v309_v15 = vmov 0.0  }
   0x4   :  { %v265_v3 = vld [vmem:[%s378_s2] sm:$0xff]  ;;  %182 = vmatpush.bf16.msra.mxu2 %v270_v5  ;;  %v269_v6 = vld [vmem:[%s379_s3 + $0x10] sm:$0xff]  ;;  %v268_v9 = vld [vmem:[%s379_s3 + $0x8] sm:$0xff]  ;;  %24 = vst.msk [vmem:[#allocation2] sm:$0xff] %vm23_vm0, %v309_v15  ;;  %vm174_vm9 = vcmask 523264   ;;  %s209_s7 = sshll.u32 %s380_s4, 4  ;;  %s210_s7 = int_to_ptr.hbm [resolvable:$true] %s209_s7 }
   0x5   :  { %v262_v4 = vld [vmem:[%s376_s0] sm:$0xff]  ;;  %25 = vst.msk [vmem:[#allocation2 + $0x8] sm:$0xff] %vm23_vm0, %v309_v15  ;;  %s311_s8 = smov 128   ;;  %s312_s9 = smov 8  }
   0x6   :  { %v267_v10 = vld [vmem:[%s379_s3] sm:$0xff]  ;;  %s310_s3 = smov [#allocation3]  }
   0x7   :  { %60 = vmatpush.bf16.msra.mxu0 %v263_v2  ;;  %90 = vmatpush.bf16.msra.mxu1 %v265_v3  ;;  %s207_s30 = sshll.u32 %s310_s3, 4  ;;  %s208_s30 = int_to_ptr.vmem [resolvable:$true] %s207_s30 }
   0x8   :  { %183 = vmatpush.bf16.msra.mxu2 %v269_v6 }
   0xa   :  { %233 = vmatmul.msk.bf16.vlgmr.msra.gmra.mxu0 %vm23_vm0, %v262_v4  ;;  %242 = vmatmul.msk.bf16.vlgmr.msra.gmra.mxu1 %vm23_vm0, %v262_v4 }
   0xb   :  { %v139_v45 = vld [vmem:[#allocation2] sm:$0xff] }
   0xc   :  { %184 = vmatpush.bf16.msra.mxu2 %v268_v9  ;;  %v140_v48 = vld [vmem:[#allocation2 + $0x8] sm:$0xff] }
  0x10   :  { %185 = vmatpush.bf16.msra.mxu2 %v267_v10 }
  0x87   :  { %v62_v7 = vpop.f32.mrf.mxu0  ;;  %v92_v27 = vpop.f32.mrf.mxu1 }
  0x88   :  { %v243_v8 = vmul.f32 -1.442695, %v62_v7 }
  0x8a   :  { %275 = vpow2.f32 %v243_v8 }
  0x8f   :  { %v64_v11 = vpop.f32.mrf.mxu0  ;;  %v94_v41 = vpop.f32.mrf.mxu1 }
  0x90   :  { %v276_v12 = vpop.eup %275  ;;  %v244_v13 = vmul.f32 -1.442695, %v64_v11 }
  0x91   :  { %v103_v14 = vadd.f32 1.0, %v276_v12 }
  0x92   :  { %277 = vpow2.f32 %v244_v13 }
  0x93   :  { %279 = vrcp.f32 %v103_v14  ;;  %v116_v24 = vand.u32 2147483648, %v103_v14  ;;  %vm110_vm2 = vweird.f32 %v103_v14  ;;  %v114_v25 = vand.u32 2147483647, %v103_v14 }
  0x95   :  { %v117_v30 = vor.u32 1.1754944e-38, %v116_v24  ;;  %vm115_vm4 = vcmp.eq.f32.partialorder %v114_v25, 8.507059e+37 }
  0x98   :  { %v278_v16 = vpop.eup %277 }
  0x99   :  { %v280_v17 = vpop.eup %279  ;;  %v104_v18 = vadd.f32 1.0, %v278_v16 }
  0x9a   :  { %v106_v19 = vmul.f32 %v280_v17, %v103_v14  ;;  %vm111_vm1 = vweird.f32 %v280_v17 }
  0x9b   :  { %281 = vrcp.f32 %v104_v18  ;;  %vm112_vm3 = vmor %vm110_vm2, %vm111_vm1  ;;  %v131_v31 = vand.u32 2147483648, %v104_v18  ;;  %v129_v33 = vand.u32 2147483647, %v104_v18  ;;  %vm125_vm6 = vweird.f32 %v104_v18 }
  0x9c   :  { %v107_v20 = vsub.f32 1.0, %v106_v19 }
  0x9d   :  { %v132_v36 = vor.u32 1.1754944e-38, %v131_v31  ;;  %vm130_vm8 = vcmp.eq.f32.partialorder %v129_v33, 8.507059e+37 }
  0x9e   :  { %v108_v21 = vmul.f32 %v280_v17, %v107_v20 }
  0xa0   :  { %v109_v22 = vadd.f32 %v280_v17, %v108_v21 }
  0xa1   :  { %v282_v23 = vpop.eup %281 }
  0xa2   :  { %v121_v26 = vmul.f32 %v282_v23, %v104_v18  ;;  %v113_v28 = vsel %vm112_vm3, %v280_v17, %v109_v22  ;;  %vm126_vm5 = vweird.f32 %v282_v23 }
  0xa3   :  { %v118_v34 = vsel %vm115_vm4, %v117_v30, %v113_v28  ;;  %vm127_vm7 = vmor %vm125_vm6, %vm126_vm5 }
  0xa4   :  { %v122_v29 = vsub.f32 1.0, %v121_v26  ;;  %v135_v37 = vmul.f32 %v118_v34, %v62_v7 }
  0xa6   :  { %v123_v32 = vmul.f32 %v282_v23, %v122_v29  ;;  %v137_v42 = vmul.f32 %v135_v37, %v92_v27 }
  0xa8   :  { %v124_v35 = vadd.f32 %v282_v23, %v123_v32 }
  0xaa   :  { %v128_v38 = vsel %vm127_vm7, %v282_v23, %v124_v35 }
  0xab   :  { %v133_v39 = vsel %vm130_vm8, %v132_v36, %v128_v38 }
  0xac   :  { %v136_v40 = vmul.f32 %v133_v39, %v64_v11 }
  0xae   :  { %v138_v43 = vmul.f32 %v136_v40, %v94_v41 }
  0xb0   :  { %v141_v44 = vpack.c.bf16 %v138_v43, %v137_v42 }
  0xb2   :  { %261 = vmatmul.msk.bf16.vlgmr.msra.gmra.mxu2 %vm174_vm9, %v141_v44 }
 0x135   :  { %v187_v46 = vpop.f32.mrf.mxu2 }
 0x136   :  { %v192_v47 = vadd.f32 %v187_v46, %v139_v45 }
 0x138   :  { %194 = vst.msk [vmem:[#allocation2] sm:$0xff] %vm23_vm0, %v192_v47 }
 0x13d   :  { %v189_v49 = vpop.f32.mrf.mxu2 }
 0x13e   :  { %v193_v50 = vadd.f32 %v189_v49, %v140_v48 }
 0x13f   :  { %v199_v51 = vld [vmem:[#allocation2] sm:$0xff] }
 0x140   :  { %195 = vst.msk [vmem:[#allocation2 + $0x8] sm:$0xff] %vm23_vm0, %v193_v50 }
 0x141   :  { %201 = vst.msk [vmem:[#allocation3] sm:$0xff] %vm23_vm0, %v199_v51 }
 0x147   :  { %v200_v52 = vld [vmem:[#allocation2 + $0x8] sm:$0xff] }
 0x148   :  { %202 = vst.msk [vmem:[#allocation3 + $0x8] sm:$0xff] %vm23_vm0, %v200_v52 }
 0x149   :  { %215 = dma.vmem_to_hbm [thread:$0]  %s208_s30, 256, %s210_s7, [#allocation4], %s311_s8, %s311_s8, %s312_s9  }
 0x14a   :  { %307 = dma.done.wait [#allocation4], 256  }
 0x14b   :  { %308 = vsyncadd [#allocation4], 4294967040 }
 0x14c   :  { %220 = vsyncpa [#allocation4], 1 }

</bundles_post_ra>
